<compile_context>
chip_gen: v7x
topology: tpu7x:2x2x1
jax: 0.10.0
libtpu: 0.0.40
codegen_flags: <defaults>
</compile_context>

<pallas_src>
from functools import partial

import jax
import jax.numpy as jnp
from jax.experimental import pallas as pl
from jax.experimental.pallas import tpu as pltpu


def _residual_add_kernel(x_ref, o_ref):
    # blocks(x) + shortcut(x) with both Identity  ->  x + x
    v = x_ref[...]
    o_ref[...] = v + v


def _cdiv(a, b):
    return -(-a // b)


def _choose_lane(total):
    # Widest lane-dense factorization (unmasked vst) that still leaves >= 8 rows.
    candidates = (4096, 2048, 1024, 512, 256, 128)
    for lane in candidates:
        if total % lane == 0 and (total // lane) >= 8:
            return lane
    for lane in candidates:
        if total % lane == 0:
            return lane
    return 128  # not divisible by 128: padded fallback path below handles it


def _choose_block_rows(rows, lane, elem_bytes):
    # ~4 MiB blocks: big enough to amortize per-step overhead even on v7x's 3.2 TB/s
    # HBM, small enough that 2x(in+out) double-buffered live VMEM is ~16 MiB.
    target_block_bytes = 4 << 20
    target_rows = max(8, (target_block_bytes // (lane * elem_bytes)) // 8 * 8)

    if rows <= target_rows:
        # Small tensor: if it still spans two sublane-aligned halves, split into 2
        # even blocks so both v7x TensorCores get work and DMAs pipeline; otherwise
        # a single full-extent block.
        if rows >= 16 and (rows // 2) % 8 == 0:
            return rows // 2
        return rows

    # Large tensor: >= 2 blocks, rebalanced so the ragged last block isn't tiny.
    num_blocks = max(2, _cdiv(rows, target_rows))
    block_rows = _cdiv(rows, num_blocks)
    align = 32 if block_rows >= 32 else 8  # sublane-tile safe (f32/bf16/int8)
    block_rows = _cdiv(block_rows, align) * align
    return min(block_rows, rows)


@partial(jax.jit, static_argnums=(1, 2), donate_argnums=(0,))
def residual_block_forward(x, in_channels, out_channels):
    """Pallas implementation of ResidualBlock.forward (Identity blocks/shortcut).

    x: [N, C, H, W] (NCHW, matching PyTorch). Returns 2*x with the same shape.
    The input buffer is donated (mirrors PyTorch's in-place `x += residual`).
    """
    assert x.shape[1] == in_channels
    # should_apply_shortcut only swaps in another Identity; semantics unchanged.
    del out_channels

    orig_shape = x.shape
    total = x.size
    elem_bytes = jnp.dtype(x.dtype).itemsize
    lane = _choose_lane(total)

    flat = x.reshape(-1)
    pad_lane = (-total) % lane
    if pad_lane:
        # TODO(synk): replace this pad (one extra HBM round trip) with a lane=128
        # masked-tail kernel for activations whose size is not a multiple of 128.
        flat = jnp.pad(flat, (0, pad_lane))
    rows = flat.shape[0] // lane
    x2d = flat.reshape(rows, lane)

    block_rows = _choose_block_rows(rows, lane, elem_bytes)
    grid = (_cdiv(rows, block_rows),)  # ragged last block handled by Pallas masking

    out2d = pl.pallas_call(
        _residual_add_kernel,
        out_shape=jax.ShapeDtypeStruct((rows, lane), x.dtype),
        grid=grid,
        in_specs=[pl.BlockSpec((block_rows, lane), lambda i: (i, 0))],
        out_specs=pl.BlockSpec((block_rows, lane), lambda i: (i, 0)),
        input_output_aliases={0: 0},
        compiler_params=pltpu.CompilerParams(
            dimension_semantics=("parallel",),
            vmem_limit_bytes=32 << 20,
        ),
    )(x2d)

    if pad_lane:
        return out2d.reshape(-1)[:total].reshape(orig_shape)
    return out2d.reshape(orig_shape)


if __name__ == "__main__":
    key = jax.random.PRNGKey(0)
    N, C, H, W = 2, 4, 16, 16
    x = jax.random.normal(key, (N, C, H, W), dtype=jnp.float32)

    # Reference computed BEFORE the call: x is donated into the kernel wrapper,
    # matching the in-place `x += residual` semantics of the PyTorch module.
    ref = jax.block_until_ready(x + x)

    out = residual_block_forward(x, C, C)
    out = jax.block_until_ready(out)

    assert out.shape == (N, C, H, W)
    assert out.dtype == ref.dtype
    assert jnp.allclose(out, ref, atol=1e-6), "mismatch vs reference"

    print("KERNEL_OK")
</pallas_src>

<mosaic_0001>
module attributes {stable_mosaic.version = 11 : i64} {
  func.func @_residual_add_kernel(%arg0: i32, %arg1: memref<8x256xf32, #tpu.memory_space<vmem>>, %arg2: memref<8x256xf32, #tpu.memory_space<vmem>>) attributes {dimension_semantics = [#tpu.dimension_semantics<parallel>], iteration_bounds = array<i64: 1>, scalar_prefetch = 0 : i64, scratch_operands = 0 : i64, tpu.core_type = #tpu.core_type<tc>, window_params = [{transform_indices = @transform_0, window_bounds = array<i64: 8, 256>}, {transform_indices = @transform_1, window_bounds = array<i64: 8, 256>}]} {
    %c0 = arith.constant 0 : index
    %c0_0 = arith.constant 0 : index
    %0 = vector.load %arg1[%c0, %c0_0] : memref<8x256xf32, #tpu.memory_space<vmem>>, vector<8x256xf32>
    %1 = arith.addf %0, %0 : vector<8x256xf32>
    %c0_1 = arith.constant 0 : index
    %c0_2 = arith.constant 0 : index
    %2 = vector.load %arg2[%c0_1, %c0_2] : memref<8x256xf32, #tpu.memory_space<vmem>>, vector<8x256xf32>
    tpu.vector_store %arg2[%c0_1, %c0_2], %1 {strides = array<i32>} : memref<8x256xf32, #tpu.memory_space<vmem>>, vector<8x256xf32>,
    return
  }
  func.func @transform_0(%arg0: i32) -> (i32, i32) {
    %c0_i32 = arith.constant 0 : i32
    %c0_i32_0 = arith.constant 0 : i32
    return %arg0, %c0_i32 : i32, i32
  }
  func.func @transform_1(%arg0: i32) -> (i32, i32) {
    %c0_i32 = arith.constant 0 : i32
    %c0_i32_0 = arith.constant 0 : i32
    return %arg0, %c0_i32 : i32, i32
  }
}

</mosaic_0001>

<bundles_post_ra>
// kernel: residual_block_forward.1
= control target key start
LH: loop header
LB: loop body
LE: loop exit
PB: predicated region body
PF: predicated region fallthrough
CT: control target
= control target key end

     0   :  { %s40_s0 = inlined_call_operand.vmem [shape: f32[8,256], index: 0, kind: input, shape index: {}, may-alias: {0,1}]   ;;  %s41_s1 = inlined_call_operand.vmem [shape: f32[8,256], index: 1, kind: output, shape index: {}, may-alias: {0,1}]  }
   0x1   :  { %v8_v0 = vld [vmem:[%s40_s0] sm:$0xff]  ;;  %v9_v1 = vld [vmem:[%s40_s0 + $0x8] sm:$0xff] }
   0x2   :  { %v10_v2 = vadd.f32 %v8_v0, %v8_v0  ;;  %v11_v3 = vadd.f32 %v9_v1, %v9_v1 }
   0x4   :  { %12 = vst [vmem:[%s41_s1] sm:$0xff] %v10_v2  ;;  %13 = vst [vmem:[%s41_s1 + $0x8] sm:$0xff] %v11_v3 }

</bundles_post_ra>
